<compile_context>
chip_gen: v7x
topology: tpu7x:2x2x1
jax: 0.10.0
libtpu: 0.0.40
codegen_flags: <defaults>
</compile_context>

<pallas_src>
import functools

import jax
import jax.numpy as jnp
from jax import lax
from jax.experimental import pallas as pl
from jax.experimental.pallas import tpu as pltpu


NEG_SLOPE = 0.01  # nn.LeakyReLU() default negative_slope


def autopad(k, p=None):
    if p is None:
        p = k // 2 if isinstance(k, int) else [x // 2 for x in k]
    return p


def _round_up(x, m):
    return ((x + m - 1) // m) * m


def _pick_tiles(M, C2, K):
    """Tile sizes that fit comfortably in v7x's 64 MiB VMEM (and v5e/v6e's 128)."""
    # N tile: single j step for typical CBL widths so the dominant patches
    # stream is read from HBM exactly once; 256 otherwise (fills the 256-lane
    # MXU on v6e/v7x); 128 as a fallback.
    C_pad = _round_up(C2, 128)
    if C_pad <= 512:
        tn = C_pad
    elif C_pad % 256 == 0:
        tn = 256
    else:
        tn = 128

    # K tile: take the whole reduction in one shot when it fits (most CBL
    # layers); cap at 2048 (multiple of 256) for very deep K -- the ragged
    # tail is then masked in-kernel rather than padded in HBM.
    TK_MAX = 2048
    tk = K if K <= TK_MAX else TK_MAX

    # M tile: large (amortizes ~0.35us per grid step), but keep >= 2 parallel
    # (i*j) grid steps when it is cheap so both v7x TensorCores get work.
    tm = 512
    while tm > 128 and tm >= 2 * _round_up(M, 128):
        tm //= 2
    if (C_pad // tn) == 1 and pl.cdiv(M, tm) < 2 and tm > 128:
        tm //= 2
    tm = max(tm, 128)
    return tm, tn, tk, C_pad


def _cbl_kernel(x_ref, w_ref, shift_ref, o_ref, acc_ref, *, k_rem):
    # x_ref:     (tm, tk)  bf16 im2col patch tile (K tail may hold garbage)
    # w_ref:     (tk, tn)  bf16 conv weights (BN scale folded, K/N zero-padded)
    # shift_ref: (1,  tn)  f32  beta - mean * scale
    # o_ref:     (tm, tn)  output tile
    # acc_ref:   (tm, tn)  f32 accumulator scratch across the K grid axis
    kk = pl.program_id(2)
    nk = pl.num_programs(2)

    @pl.when(kk == 0)
    def _():
        acc_ref[...] = jnp.zeros_like(acc_ref)

    x = x_ref[...]
    if k_rem:
        # Last K block is partial (patches are NOT padded along K): zero the
        # tail so unspecified out-of-bounds block contents (possibly NaN/Inf)
        # never reach the MXU.  Cheap VPU work hidden under the MXU loop.
        col = lax.broadcasted_iota(jnp.int32, x.shape, 1)
        lim = jnp.where(kk == nk - 1, k_rem, x.shape[1])
        x = jnp.where(col < lim, x, jnp.zeros_like(x))

    acc_ref[...] += jnp.dot(x, w_ref[...], preferred_element_type=jnp.float32)

    @pl.when(kk == nk - 1)
    def _():
        y = acc_ref[...] + shift_ref[...]                  # f32 epilogue
        o_ref[...] = jnp.where(y > 0, y, NEG_SLOPE * y).astype(o_ref.dtype)


@functools.partial(jax.jit, static_argnames=("k", "s", "p"))
def cbl_forward(x, conv_w, bn_gamma, bn_beta, bn_mean, bn_var, *, k, s, p,
                eps=1e-5):
    """x: (N, C1, H, W) NCHW.  conv_w: (C2, C1, k, k) (PyTorch OIHW)."""
    N, C1, H, W = x.shape
    C2 = conv_w.shape[0]
    K = C1 * k * k
    Ho = (H + 2 * p - k) // s + 1
    Wo = (W + 2 * p - k) // s + 1
    M = N * Ho * Wo

    # ---- im2col glue: pure data movement, K ordered (kh, kw, C1) -----------
    x_nhwc = jnp.transpose(x, (0, 2, 3, 1)).astype(jnp.bfloat16)
    if k == 1 and p == 0:
        # Pointwise-conv fast path: no patch extraction at all.
        patches = x_nhwc[:, ::s, ::s, :].reshape(M, C1)
    else:
        x_p = jnp.pad(x_nhwc, ((0, 0), (p, p), (p, p), (0, 0)))
        slabs = []
        for kh in range(k):
            for kw in range(k):
                slabs.append(lax.slice(
                    x_p,
                    (0, kh, kw, 0),
                    (N, kh + (Ho - 1) * s + 1, kw + (Wo - 1) * s + 1, C1),
                    (1, s, s, 1)))
        patches = jnp.concatenate(slabs, axis=-1).reshape(M, K)

    # ---- fold BN (inference form): scale into weights, shift kept apart ----
    scale = bn_gamma / jnp.sqrt(bn_var + eps)                       # (C2,)
    shift = (bn_beta - bn_mean * scale).reshape(1, C2)              # (1, C2)
    w2d = jnp.transpose(conv_w, (0, 2, 3, 1)).reshape(C2, K)        # (kh,kw,C1)
    w2d = (w2d * scale[:, None]).T.astype(jnp.bfloat16)             # (K, C2)

    # ---- tiling: lane-dense output, no pad copy of the big patches array ---
    tm, tn, tk, C_pad = _pick_tiles(M, C2, K)
    K_pad = _round_up(K, tk)
    k_rem = K % tk                      # 0 => last K block is full, no mask

    # Only the tiny weight / shift arrays are zero-padded.
    w2d = jnp.pad(w2d, ((0, K_pad - K), (0, C_pad - C2)))
    shift = jnp.pad(shift, ((0, 0), (0, C_pad - C2))).astype(jnp.float32)

    grid = (pl.cdiv(M, tm), C_pad // tn, K_pad // tk)

    out_bytes = jnp.dtype(x.dtype).itemsize
    vmem_need = (2 * (tm * tk * 2 + tk * tn * 2 + tn * 4 + tm * tn * out_bytes)
                 + tm * tn * 4)
    # Comfortable headroom, but stay under v7x's 64 MiB per-core VMEM.
    vmem_limit = min(max(32 * 1024 * 1024, 2 * vmem_need), 56 * 1024 * 1024)

    cost = pl.CostEstimate(
        flops=2 * M * K_pad * C_pad,
        transcendentals=0,
        bytes_accessed=(M * K * 2 + w2d.size * 2 + shift.size * 4
                        + M * C_pad * out_bytes))

    out = pl.pallas_call(
        functools.partial(_cbl_kernel, k_rem=k_rem),
        out_shape=jax.ShapeDtypeStruct((M, C_pad), x.dtype),
        grid_spec=pltpu.PrefetchScalarGridSpec(
            num_scalar_prefetch=0,
            grid=grid,
            in_specs=[
                pl.BlockSpec((tm, tk), lambda i, j, kk: (i, kk)),
                pl.BlockSpec((tk, tn), lambda i, j, kk: (kk, j)),
                pl.BlockSpec((1, tn), lambda i, j, kk: (0, j)),
            ],
            out_specs=pl.BlockSpec((tm, tn), lambda i, j, kk: (i, j)),
            scratch_shapes=[pltpu.VMEM((tm, tn), jnp.float32)],
        ),
        compiler_params=pltpu.CompilerParams(
            dimension_semantics=("parallel", "parallel", "arbitrary"),
            vmem_limit_bytes=vmem_limit),
        cost_estimate=cost,
    )(patches, w2d, shift)

    out = out[:, :C2]                                         # (M, C2)
    out = out.reshape(N, Ho, Wo, C2).transpose(0, 3, 1, 2)    # -> NCHW
    return out


def _reference(x, conv_w, bn_gamma, bn_beta, bn_mean, bn_var, k, s, p,
               eps=1e-5):
    y = lax.conv_general_dilated(
        x, conv_w, window_strides=(s, s), padding=[(p, p), (p, p)],
        dimension_numbers=("NCHW", "OIHW", "NCHW"))
    scale = (bn_gamma / jnp.sqrt(bn_var + eps)).reshape(1, -1, 1, 1)
    shift = (bn_beta - bn_mean * bn_gamma / jnp.sqrt(bn_var + eps)
             ).reshape(1, -1, 1, 1)
    y = y * scale + shift
    return jnp.where(y > 0, y, NEG_SLOPE * y)


if __name__ == "__main__":
    N, C1, C2, H, W = 2, 4, 8, 16, 16
    key = jax.random.PRNGKey(0)
    kx, kw, kg, kb, km, kv, kw1 = jax.random.split(key, 7)
    x = jax.random.normal(kx, (N, C1, H, W), dtype=jnp.float32)
    bn_gamma = 1.0 + 0.1 * jax.random.normal(kg, (C2,), dtype=jnp.float32)
    bn_beta = 0.1 * jax.random.normal(kb, (C2,), dtype=jnp.float32)
    bn_mean = 0.1 * jax.random.normal(km, (C2,), dtype=jnp.float32)
    bn_var = jnp.abs(1.0 + 0.1 * jax.random.normal(kv, (C2,), dtype=jnp.float32))

    # ---- CBL(c1=4, c2=8, k=3, s=1): padding = autopad(3) = 1 ----
    k3, s3 = 3, 1
    p3 = autopad(k3, None)
    conv_w3 = jax.random.normal(kw, (C2, C1, k3, k3), dtype=jnp.float32) * 0.1
    out3 = cbl_forward(x, conv_w3, bn_gamma, bn_beta, bn_mean, bn_var,
                       k=k3, s=s3, p=p3)
    jax.block_until_ready(out3)
    ref3 = _reference(x, conv_w3, bn_gamma, bn_beta, bn_mean, bn_var, k3, s3, p3)
    assert out3.shape == (N, C2, H, W), out3.shape
    err3 = float(jnp.max(jnp.abs(out3 - ref3)))
    assert err3 < 5e-2, err3          # bf16 MXU operands, f32 accumulation

    # ---- CBL(c1=4, c2=8, k=1, s=1): pointwise fast path, padding = 0 ----
    k1, s1 = 1, 1
    p1 = autopad(k1, None)
    conv_w1 = jax.random.normal(kw1, (C2, C1, k1, k1), dtype=jnp.float32) * 0.1
    out1 = cbl_forward(x, conv_w1, bn_gamma, bn_beta, bn_mean, bn_var,
                       k=k1, s=s1, p=p1)
    jax.block_until_ready(out1)
    ref1 = _reference(x, conv_w1, bn_gamma, bn_beta, bn_mean, bn_var, k1, s1, p1)
    assert out1.shape == (N, C2, H, W), out1.shape
    err1 = float(jnp.max(jnp.abs(out1 - ref1)))
    assert err1 < 5e-2, err1

    print("KERNEL_OK")
</pallas_src>

<mosaic_0001>
module attributes {stable_mosaic.version = 11 : i64} {
  func.func @_cbl_kernel(%arg0: i32, %arg1: i32, %arg2: i32, %arg3: memref<256x36xbf16, #tpu.memory_space<vmem>>, %arg4: memref<36x128xbf16, #tpu.memory_space<vmem>>, %arg5: memref<1x128xf32, #tpu.memory_space<vmem>>, %arg6: memref<256x128xf32, #tpu.memory_space<vmem>>, %arg7: memref<256x128xf32, #tpu.memory_space<vmem>>) attributes {dimension_semantics = [#tpu.dimension_semantics<parallel>, #tpu.dimension_semantics<parallel>, #tpu.dimension_semantics<arbitrary>], iteration_bounds = array<i64: 2, 1, 1>, scalar_prefetch = 0 : i64, scratch_operands = 1 : i64, tpu.core_type = #tpu.core_type<tc>, window_params = [{transform_indices = @transform_0, window_bounds = array<i64: 256, 36>}, {transform_indices = @transform_1, window_bounds = array<i64: 36, 128>}, {transform_indices = @transform_2, window_bounds = array<i64: 1, 128>}, {transform_indices = @transform_3, window_bounds = array<i64: 256, 128>}]} {
    %c0_i32 = arith.constant 0 : i32
    %0 = arith.cmpi eq, %arg2, %c0_i32 : i32
    %1 = arith.extui %0 : i1 to i32
    %c0_i32_0 = arith.constant 0 : i32
    %2 = arith.cmpi ne, %1, %c0_i32_0 : i32
    scf.if %2 {
      %cst_10 = arith.constant 0.000000e+00 : f32
      %12 = vector.broadcast %cst_10 : f32 to vector<256x128xf32>
      %c0_11 = arith.constant 0 : index
      %c0_12 = arith.constant 0 : index
      %13 = vector.load %arg7[%c0_11, %c0_12] : memref<256x128xf32, #tpu.memory_space<vmem>>, vector<256x128xf32>
      tpu.vector_store %arg7[%c0_11, %c0_12], %12 {strides = array<i32>} : memref<256x128xf32, #tpu.memory_space<vmem>>, vector<256x128xf32>,
    } else {
    }
    %c0 = arith.constant 0 : index
    %c0_1 = arith.constant 0 : index
    %3 = vector.load %arg3[%c0, %c0_1] : memref<256x36xbf16, #tpu.memory_space<vmem>>, vector<256x36xbf16>
    %c0_2 = arith.constant 0 : index
    %c0_3 = arith.constant 0 : index
    %4 = vector.load %arg7[%c0_2, %c0_3] : memref<256x128xf32, #tpu.memory_space<vmem>>, vector<256x128xf32>
    %c0_4 = arith.constant 0 : index
    %c0_5 = arith.constant 0 : index
    %5 = vector.load %arg4[%c0_4, %c0_5] : memref<36x128xbf16, #tpu.memory_space<vmem>>, vector<36x128xbf16>
    %cst = arith.constant dense<0.000000e+00> : vector<256x128xf32>
    %6 = tpu.matmul %3, %5, %cst {dimension_numbers = #tpu.dot_dimension_numbers<[1], [0], [0], [1], [0, 0, 1, 1], [], []>} : vector<256x36xbf16>, vector<36x128xbf16>, vector<256x128xf32> -> vector<256x128xf32>
    %7 = arith.addf %4, %6 : vector<256x128xf32>
    %c0_6 = arith.constant 0 : index
    %c0_7 = arith.constant 0 : index
    %8 = vector.load %arg7[%c0_6, %c0_7] : memref<256x128xf32, #tpu.memory_space<vmem>>, vector<256x128xf32>
    tpu.vector_store %arg7[%c0_6, %c0_7], %7 {strides = array<i32>} : memref<256x128xf32, #tpu.memory_space<vmem>>, vector<256x128xf32>,
    %c0_i32_8 = arith.constant 0 : i32
    %9 = arith.cmpi eq, %arg2, %c0_i32_8 : i32
    %10 = arith.extui %9 : i1 to i32
    %c0_i32_9 = arith.constant 0 : i32
    %11 = arith.cmpi ne, %10, %c0_i32_9 : i32
    scf.if %11 {
      %c0_10 = arith.constant 0 : index
      %c0_11 = arith.constant 0 : index
      %12 = vector.load %arg7[%c0_10, %c0_11] : memref<256x128xf32, #tpu.memory_space<vmem>>, vector<256x128xf32>
      %c0_12 = arith.constant 0 : index
      %c0_13 = arith.constant 0 : index
      %13 = vector.load %arg5[%c0_12, %c0_13] : memref<1x128xf32, #tpu.memory_space<vmem>>, vector<1x128xf32>
      %14 = vector.broadcast %13 : vector<1x128xf32> to vector<256x128xf32>
      %15 = arith.addf %12, %14 : vector<256x128xf32>
      %cst_14 = arith.constant 0.000000e+00 : f32
      %16 = vector.broadcast %cst_14 : f32 to vector<256x128xf32>
      %17 = arith.cmpf ogt, %15, %16 : vector<256x128xf32>
      %cst_15 = arith.constant 0.00999999977 : f32
      %18 = vector.broadcast %cst_15 : f32 to vector<256x128xf32>
      %19 = arith.mulf %18, %15 : vector<256x128xf32>
      %20 = arith.select %17, %15, %19 : vector<256x128xi1>, vector<256x128xf32>
      %c0_16 = arith.constant 0 : index
      %c0_17 = arith.constant 0 : index
      %21 = vector.load %arg6[%c0_16, %c0_17] : memref<256x128xf32, #tpu.memory_space<vmem>>, vector<256x128xf32>
      tpu.vector_store %arg6[%c0_16, %c0_17], %20 {strides = array<i32>} : memref<256x128xf32, #tpu.memory_space<vmem>>, vector<256x128xf32>,
    } else {
    }
    return
  }
  func.func @transform_0(%arg0: i32, %arg1: i32, %arg2: i32) -> (i32, i32) {
    %c0_i32 = arith.constant 0 : i32
    return %arg0, %arg2 : i32, i32
  }
  func.func @transform_1(%arg0: i32, %arg1: i32, %arg2: i32) -> (i32, i32) {
    %c0_i32 = arith.constant 0 : i32
    return %arg2, %arg1 : i32, i32
  }
  func.func @transform_2(%arg0: i32, %arg1: i32, %arg2: i32) -> (i32, i32) {
    %c0_i32 = arith.constant 0 : i32
    %c0_i32_0 = arith.constant 0 : i32
    return %c0_i32, %arg1 : i32, i32
  }
  func.func @transform_3(%arg0: i32, %arg1: i32, %arg2: i32) -> (i32, i32) {
    %c0_i32 = arith.constant 0 : i32
    return %arg0, %arg1 : i32, i32
  }
}

</mosaic_0001>

<bundles_post_ra>
// kernel: cbl_forward.1
= control target key start
LH: loop header
LB: loop body
LE: loop exit
PB: predicated region body
PF: predicated region fallthrough
CT: control target
= control target key end

     0   :  { %s1252_s12 = smov 0   ;;  %s1254_s13 = smov 0   ;;  %s1403_s0 = inlined_call_operand.vmem [shape: bf16[512,36], index: 0, kind: input, shape index: {}]   ;;  %s1404_s1 = inlined_call_operand.vmem [shape: bf16[36,128], index: 1, kind: input, shape index: {}]   ;;  %s1405_s2 = inlined_call_operand.vmem [shape: f32[1,128], index: 2, kind: input, shape index: {}]   ;;  %s1406_s3 = inlined_call_operand.vmem [shape: f32[512,128], index: 3, kind: output, shape index: {}]  }
   0x1   :  { %s1256_s14 = smov 0  }
   0x2 LB: > { %s32_s15 = sadd.s32 1, %s1226_s13  ;;  %p1057_p0 = scmp.ge.s32.totalorder %s1230_s14, 1  ;;  %s1230_s14 = sphi %s1256_s14, %s13_s14   ;;  %s1226_s13 = sphi %s1254_s13, %s1408_s13   ;;  %s1222_s12 = sphi %s1252_s12, %s1407_s12  }
   0x3   : > { %p34_p1 = scmp.ge.s32.totalorder %s32_s15, 2  ;;  %p188_p2 = scmp.lt.s32.totalorder %s1230_s14, 3 }
   0x5   : > { %s1410_s15 = smov (%p34_p1, %s32_s15), 0  ;;  %p189_p3 = pnand %p1057_p0, %p188_p2 }
   0x6   : > { %v1189_v0 = vld [vmem:[%s1404_s1] sm:$0xff] (!%p189_p3)   ;;  %v1190_v1 = vld [vmem:[%s1404_s1 + $0x8] sm:$0xff] (!%p189_p3)   ;;  %s1058_s20 = sshll.u32 (!%p189_p3), %s1222_s12, 5  ;;  %v1191_v2 = vld [vmem:[%s1404_s1 + $0x10] ss:$0 sps:$4 sm:$0x33] (!%p189_p3)  }
   0x7   : > { %192 = sbr.rel (%p189_p3) target bundleno = 269 (0x10d), region = 32  ;;  %1119 = vmatprep.subr.bf16.mxu0 (!%p189_p3), %v1189_v0  ;;  %1157 = vmatprep.subr.bf16.mxu1 (!%p189_p3), %v1189_v0  ;;  %p230_p4 = scmp.lt.s32.totalorder (!%p189_p3), %s1058_s20, 63  ;;  %vm509_vm0 = vcmask (!%p189_p3), 1041408   ;;  %vm460_vm1 = vcmask (!%p189_p3), 293888   ;;  %v1322_v20 = vld [vmem:[%s1405_s2] ss:$0 sm:$0xff] (!%p189_p3) }
   0x8   : > { %1120 = vmatpush3.bf16.msra.mxu0 (!%p189_p3), %v1189_v0  ;;  %1160 = vmatpush3.bf16.msra.mxu1 (!%p189_p3), %v1189_v0  ;;  %v511_v3 = vsel (!%p189_p3), %vm509_vm0, %v1191_v2, 0 }
   0x9   : > { %1121 = vmatprep.subr.bf16.mxu0 (!%p189_p3), %v1190_v1  ;;  %1158 = vmatprep.subr.bf16.mxu1 (!%p189_p3), %v1190_v1 }
   0xc   : > { %1122 = vmatpush3.bf16.msra.mxu0 (!%p189_p3), %v1190_v1  ;;  %1161 = vmatpush3.bf16.msra.mxu1 (!%p189_p3), %v1190_v1 }
   0xd   : > { %1163 = vmatprep.subr.msk.bf16.mxu0 (!%p189_p3), %vm509_vm0, %v1191_v2  ;;  %1164 = vmatprep.subr.msk.bf16.mxu1 (!%p189_p3), %vm509_vm0, %v1191_v2 }
   0xe   : > { %s1412_s20 = smov (!%p230_p4, %s1058_s20), 63 }
   0xf   : > { %s1059_s23 = sshll.u32 %s1412_s20, 2  ;;  %s1061_s29 = sshll.u32 %s1412_s20, 3 }
  0x10   : > { %s1285_s26 = scalar_lea.vmem %s1403_s0, %s1059_s23  ;;  %1124 = vmatpush3.bf16.msra.mxu0 %v511_v3  ;;  %1162 = vmatpush3.bf16.msra.mxu1 %v511_v3  ;;  %s1332_s5 = scalar_lea.vmem %s1406_s3, %s1061_s29 }
  0x11   : > { %v1192_v4 = vld [vmem:[%s1285_s26] sm:$0xff]   ;;  %v1194_v6 = vld [vmem:[%s1285_s26 + $0x8] sm:$0xff]   ;;  %v1196_v8 = vld [vmem:[%s1285_s26 + $0x10] sm:$0xff]  }
  0x12   : > { %v1193_v5 = vld [vmem:[%s1285_s26 + $0x40] sm:$0xff]   ;;  %1125 = vmatprep.mubr.msk.bf16.mxu0 %vm460_vm1, %v1192_v4  ;;  %v1195_v7 = vld [vmem:[%s1285_s26 + $0x48] sm:$0xff]   ;;  %v1197_v9 = vld [vmem:[%s1285_s26 + $0x50] sm:$0xff]  }
  0x13   : > { %1141 = vmatprep.mubr.msk.bf16.mxu1 %vm460_vm1, %v1193_v5  ;;  %1126 = vmatmul.mubr.msk.bf16.vlgmr.msra.gmra.mrb[0].mxu0 %vm460_vm1, %v1194_v6  ;;  %v1198_v10 = vld [vmem:[%s1285_s26 + $0x18] sm:$0xff]   ;;  %v1200_v12 = vld [vmem:[%s1285_s26 + $0x20] sm:$0xff]   ;;  %v1202_v14 = vld [vmem:[%s1285_s26 + $0x28] sm:$0xff]  }
  0x14   : > { %1142 = vmatmul.mubr.msk.bf16.vlgmr.msra.gmra.mrb[0].mxu1 %vm460_vm1, %v1195_v7  ;;  %1129 = vmatprep.mubr.msk.bf16.mxu0 %vm460_vm1, %v1196_v8  ;;  %v1199_v11 = vld [vmem:[%s1285_s26 + $0x58] sm:$0xff]   ;;  %v1201_v13 = vld [vmem:[%s1285_s26 + $0x60] sm:$0xff]   ;;  %v1203_v15 = vld [vmem:[%s1285_s26 + $0x68] sm:$0xff]  }
  0x15   : > { %1145 = vmatprep.mubr.msk.bf16.mxu1 %vm460_vm1, %v1197_v9  ;;  %v1204_v16 = vld [vmem:[%s1285_s26 + $0x30] sm:$0xff]   ;;  %v1206_v18 = vld [vmem:[%s1285_s26 + $0x38] sm:$0xff]  }
  0x16   : > { %v1205_v17 = vld [vmem:[%s1285_s26 + $0x70] sm:$0xff]   ;;  %v1207_v19 = vld [vmem:[%s1285_s26 + $0x78] sm:$0xff]  }
  0x1b   : > { %1130 = vmatmul.mubr.msk.bf16.gmra.mrb[4].mxu0 %vm460_vm1, %v1198_v10 }
  0x1c   : > { %1146 = vmatmul.mubr.msk.bf16.gmra.mrb[4].mxu1 %vm460_vm1, %v1199_v11  ;;  %1133 = vmatprep.mubr.msk.bf16.mxu0 %vm460_vm1, %v1200_v12 }
  0x1d   : > { %1149 = vmatprep.mubr.msk.bf16.mxu1 %vm460_vm1, %v1201_v13 }
  0x23   : > { %1134 = vmatmul.mubr.msk.bf16.gmra.mrb[8].mxu0 %vm460_vm1, %v1202_v14 }
  0x24   : > { %1150 = vmatmul.mubr.msk.bf16.gmra.mrb[8].mxu1 %vm460_vm1, %v1203_v15  ;;  %1137 = vmatprep.mubr.msk.bf16.mxu0 %vm460_vm1, %v1204_v16 }
  0x25   : > { %1153 = vmatprep.mubr.msk.bf16.mxu1 %vm460_vm1, %v1205_v17 }
  0x2b   : > { %1138 = vmatmul.mubr.msk.bf16.gmra.mrb[12].mxu0 %vm460_vm1, %v1206_v18 }
  0x2c   : > { %1154 = vmatmul.mubr.msk.bf16.gmra.mrb[12].mxu1 %vm460_vm1, %v1207_v19 }
  0xe6   : > { %v1127_v21 = vpop.f32.mrb[0].mxu0 }
  0xe7   : > { %v1143_v22 = vpop.f32.mrb[0].mxu1  ;;  %v782_v23 = vadd.f32 %v1127_v21, %v1322_v20  ;;  %v547_v25 = vpop.f32.mrb[1].mxu0 }
  0xe8   : > { %v798_v24 = vadd.f32 %v1143_v22, %v1322_v20  ;;  %v611_v26 = vpop.f32.mrb[1].mxu1  ;;  %v780_v27 = vadd.f32 %v1322_v20, %v547_v25  ;;  %v1128_v29 = vpop.f32.mrb[2].mxu0 }
  0xe9   : > { %v796_v28 = vadd.f32 %v1322_v20, %v611_v26  ;;  %v1144_v30 = vpop.f32.mrb[2].mxu1  ;;  %vm814_vm2 = vcmp.gt.f32.partialorder %v782_v23, 0.0  ;;  %v846_v31 = vmul.f32 0.01, %v782_v23  ;;  %v783_v37 = vadd.f32 %v1128_v29, %v1322_v20  ;;  %v550_v39 = vpop.f32.mrb[3].mxu0 }
  0xea   : > { %vm830_vm3 = vcmp.gt.f32.partialorder %v798_v24, 0.0  ;;  %v862_v32 = vmul.f32 0.01, %v798_v24  ;;  %vm812_vm4 = vcmp.gt.f32.partialorder %v780_v27, 0.0  ;;  %v844_v33 = vmul.f32 0.01, %v780_v27 }
  0xeb   : > { %vm828_vm5 = vcmp.gt.f32.partialorder %v796_v28, 0.0  ;;  %v860_v34 = vmul.f32 0.01, %v796_v28  ;;  %v878_v35 = vsel %vm814_vm2, %v782_v23, %v846_v31  ;;  %v799_v38 = vadd.f32 %v1144_v30, %v1322_v20  ;;  %v614_v40 = vpop.f32.mrb[3].mxu1 }
  0xec   : > { %v894_v36 = vsel %vm830_vm3, %v798_v24, %v862_v32  ;;  %910 = vst [vmem:[%s1332_s5 + $0x10] sm:$0xff] %v878_v35  ;;  %v876_v41 = vsel %vm812_vm4, %v780_v27, %v844_v33  ;;  %v781_v43 = vadd.f32 %v1322_v20, %v550_v39  ;;  %v797_v44 = vadd.f32 %v1322_v20, %v614_v40 }
  0xed   : > { %926 = vst [vmem:[%s1332_s5 + $0x90] sm:$0xff] %v894_v36  ;;  %v892_v42 = vsel %vm828_vm5, %v796_v28, %v860_v34  ;;  %908 = vst [vmem:[%s1332_s5] sm:$0xff] %v876_v41  ;;  %vm815_vm6 = vcmp.gt.f32.partialorder %v783_v37, 0.0  ;;  %v847_v45 = vmul.f32 0.01, %v783_v37  ;;  %vm831_vm7 = vcmp.gt.f32.partialorder %v799_v38, 0.0 }
  0xee   : > { %924 = vst [vmem:[%s1332_s5 + $0x80] sm:$0xff] %v892_v42  ;;  %v863_v46 = vmul.f32 0.01, %v799_v38  ;;  %vm813_vm8 = vcmp.gt.f32.partialorder %v781_v43, 0.0  ;;  %v845_v47 = vmul.f32 0.01, %v781_v43 }
  0xef   : > { %vm829_vm9 = vcmp.gt.f32.partialorder %v797_v44, 0.0  ;;  %v861_v48 = vmul.f32 0.01, %v797_v44  ;;  %v879_v49 = vsel %vm815_vm6, %v783_v37, %v847_v45  ;;  %v1131_v51 = vpop.f32.mrb[4].mxu0  ;;  %v1147_v52 = vpop.f32.mrb[4].mxu1 }
  0xf0   : > { %v895_v50 = vsel %vm831_vm7, %v799_v38, %v863_v46  ;;  %911 = vst [vmem:[%s1332_s5 + $0x18] sm:$0xff] %v879_v49  ;;  %v877_v53 = vsel %vm813_vm8, %v781_v43, %v845_v47  ;;  %v786_v55 = vadd.f32 %v1131_v51, %v1322_v20  ;;  %v802_v56 = vadd.f32 %v1147_v52, %v1322_v20  ;;  %v563_v57 = vpop.f32.mrb[5].mxu0  ;;  %v627_v58 = vpop.f32.mrb[5].mxu1 }
  0xf1   : > { %927 = vst [vmem:[%s1332_s5 + $0x98] sm:$0xff] %v895_v50  ;;  %v893_v54 = vsel %vm829_vm9, %v797_v44, %v861_v48  ;;  %909 = vst [vmem:[%s1332_s5 + $0x8] sm:$0xff] %v877_v53  ;;  %v784_v59 = vadd.f32 %v1322_v20, %v563_v57  ;;  %v800_v60 = vadd.f32 %v1322_v20, %v627_v58  ;;  %v1132_v61 = vpop.f32.mrb[6].mxu0  ;;  %v1148_v62 = vpop.f32.mrb[6].mxu1 }
  0xf2   : > { %925 = vst [vmem:[%s1332_s5 + $0x88] sm:$0xff] %v893_v54  ;;  %vm818_vm10 = vcmp.gt.f32.partialorder %v786_v55, 0.0  ;;  %v850_v63 = vmul.f32 0.01, %v786_v55  ;;  %vm834_vm11 = vcmp.gt.f32.partialorder %v802_v56, 0.0  ;;  %v787_v5 = vadd.f32 %v1132_v61, %v1322_v20  ;;  %v566_v7 = vpop.f32.mrb[7].mxu0 }
  0xf3   : > { %v866_v0 = vmul.f32 0.01, %v802_v56  ;;  %vm816_vm12 = vcmp.gt.f32.partialorder %v784_v59, 0.0  ;;  %v848_v1 = vmul.f32 0.01, %v784_v59  ;;  %vm832_vm13 = vcmp.gt.f32.partialorder %v800_v60, 0.0 }
  0xf4   : > { %v864_v2 = vmul.f32 0.01, %v800_v60  ;;  %v882_v3 = vsel %vm818_vm10, %v786_v55, %v850_v63  ;;  %v803_v6 = vadd.f32 %v1148_v62, %v1322_v20  ;;  %v630_v8 = vpop.f32.mrb[7].mxu1  ;;  %v785_v11 = vadd.f32 %v1322_v20, %v566_v7 }
  0xf5   : > { %v898_v4 = vsel %vm834_vm11, %v802_v56, %v866_v0  ;;  %914 = vst [vmem:[%s1332_s5 + $0x30] sm:$0xff] %v882_v3  ;;  %v880_v9 = vsel %vm816_vm12, %v784_v59, %v848_v1  ;;  %v801_v12 = vadd.f32 %v1322_v20, %v630_v8  ;;  %vm819_vm14 = vcmp.gt.f32.partialorder %v787_v5, 0.0 }
  0xf6   : > { %930 = vst [vmem:[%s1332_s5 + $0xb0] sm:$0xff] %v898_v4  ;;  %v896_v10 = vsel %vm832_vm13, %v800_v60, %v864_v2  ;;  %912 = vst [vmem:[%s1332_s5 + $0x20] sm:$0xff] %v880_v9  ;;  %v851_v13 = vmul.f32 0.01, %v787_v5  ;;  %vm835_vm15 = vcmp.gt.f32.partialorder %v803_v6, 0.0  ;;  %vm817_vm0 = vcmp.gt.f32.partialorder %v785_v11, 0.0 }
  0xf7   : > { %928 = vst [vmem:[%s1332_s5 + $0xa0] sm:$0xff] %v896_v10  ;;  %v867_v14 = vmul.f32 0.01, %v803_v6  ;;  %v849_v15 = vmul.f32 0.01, %v785_v11  ;;  %vm833_vm1 = vcmp.gt.f32.partialorder %v801_v12, 0.0 }
  0xf8   : > { %v865_v16 = vmul.f32 0.01, %v801_v12  ;;  %v883_v17 = vsel %vm819_vm14, %v787_v5, %v851_v13  ;;  %v1135_v19 = vpop.f32.mrb[8].mxu0  ;;  %v1151_v21 = vpop.f32.mrb[8].mxu1 }
  0xf9   : > { %v899_v18 = vsel %vm835_vm15, %v803_v6, %v867_v14  ;;  %915 = vst [vmem:[%s1332_s5 + $0x38] sm:$0xff] %v883_v17  ;;  %v881_v22 = vsel %vm817_vm0, %v785_v11, %v849_v15  ;;  %v790_v24 = vadd.f32 %v1135_v19, %v1322_v20  ;;  %v806_v25 = vadd.f32 %v1151_v21, %v1322_v20  ;;  %v579_v26 = vpop.f32.mrb[9].mxu0  ;;  %v643_v27 = vpop.f32.mrb[9].mxu1 }
  0xfa   : > { %931 = vst [vmem:[%s1332_s5 + $0xb8] sm:$0xff] %v899_v18  ;;  %v897_v23 = vsel %vm833_vm1, %v801_v12, %v865_v16  ;;  %913 = vst [vmem:[%s1332_s5 + $0x28] sm:$0xff] %v881_v22  ;;  %v788_v28 = vadd.f32 %v1322_v20, %v579_v26  ;;  %v804_v29 = vadd.f32 %v1322_v20, %v643_v27  ;;  %v1136_v30 = vpop.f32.mrb[10].mxu0  ;;  %v1152_v31 = vpop.f32.mrb[10].mxu1 }
  0xfb   : > { %929 = vst [vmem:[%s1332_s5 + $0xa8] sm:$0xff] %v897_v23  ;;  %vm822_vm2 = vcmp.gt.f32.partialorder %v790_v24, 0.0  ;;  %v854_v32 = vmul.f32 0.01, %v790_v24  ;;  %vm838_vm3 = vcmp.gt.f32.partialorder %v806_v25, 0.0  ;;  %v791_v38 = vadd.f32 %v1136_v30, %v1322_v20  ;;  %v582_v40 = vpop.f32.mrb[11].mxu0 }
  0xfc   : > { %v870_v33 = vmul.f32 0.01, %v806_v25  ;;  %vm820_vm4 = vcmp.gt.f32.partialorder %v788_v28, 0.0  ;;  %v852_v34 = vmul.f32 0.01, %v788_v28  ;;  %vm836_vm5 = vcmp.gt.f32.partialorder %v804_v29, 0.0 }
  0xfd   : > { %v868_v35 = vmul.f32 0.01, %v804_v29  ;;  %v886_v36 = vsel %vm822_vm2, %v790_v24, %v854_v32  ;;  %v807_v39 = vadd.f32 %v1152_v31, %v1322_v20  ;;  %v646_v41 = vpop.f32.mrb[11].mxu1  ;;  %v789_v44 = vadd.f32 %v1322_v20, %v582_v40 }
  0xfe   : > { %v902_v37 = vsel %vm838_vm3, %v806_v25, %v870_v33  ;;  %918 = vst [vmem:[%s1332_s5 + $0x50] sm:$0xff] %v886_v36  ;;  %v884_v42 = vsel %vm820_vm4, %v788_v28, %v852_v34  ;;  %v805_v45 = vadd.f32 %v1322_v20, %v646_v41  ;;  %v1139_v46 = vpop.f32.mrb[12].mxu0  ;;  %vm823_vm6 = vcmp.gt.f32.partialorder %v791_v38, 0.0 }
  0xff   : > { %934 = vst [vmem:[%s1332_s5 + $0xd0] sm:$0xff] %v902_v37  ;;  %v900_v43 = vsel %vm836_vm5, %v804_v29, %v868_v35  ;;  %v1155_v47 = vpop.f32.mrb[12].mxu1  ;;  %916 = vst [vmem:[%s1332_s5 + $0x40] sm:$0xff] %v884_v42  ;;  %v855_v48 = vmul.f32 0.01, %v791_v38  ;;  %vm839_vm7 = vcmp.gt.f32.partialorder %v807_v39, 0.0  ;;  %v794_v54 = vadd.f32 %v1139_v46, %v1322_v20 }
 0x100   : > { %932 = vst [vmem:[%s1332_s5 + $0xc0] sm:$0xff] %v900_v43  ;;  %v871_v49 = vmul.f32 0.01, %v807_v39  ;;  %vm821_vm8 = vcmp.gt.f32.partialorder %v789_v44, 0.0  ;;  %v853_v50 = vmul.f32 0.01, %v789_v44  ;;  %v810_v55 = vadd.f32 %v1155_v47, %v1322_v20 }
 0x101   : > { %vm837_vm9 = vcmp.gt.f32.partialorder %v805_v45, 0.0  ;;  %v869_v51 = vmul.f32 0.01, %v805_v45  ;;  %v887_v52 = vsel %vm823_vm6, %v791_v38, %v855_v48  ;;  %v595_v56 = vpop.f32.mrb[13].mxu0  ;;  %v659_v57 = vpop.f32.mrb[13].mxu1  ;;  %vm826_vm10 = vcmp.gt.f32.partialorder %v794_v54, 0.0 }
 0x102   : > { %v903_v53 = vsel %vm839_vm7, %v807_v39, %v871_v49  ;;  %919 = vst [vmem:[%s1332_s5 + $0x58] sm:$0xff] %v887_v52  ;;  %v885_v58 = vsel %vm821_vm8, %v789_v44, %v853_v50  ;;  %v792_v60 = vadd.f32 %v1322_v20, %v595_v56  ;;  %v808_v61 = vadd.f32 %v1322_v20, %v659_v57  ;;  %v1140_v62 = vpop.f32.mrb[14].mxu0  ;;  %v1156_v63 = vpop.f32.mrb[14].mxu1 }
 0x103   : > { %935 = vst [vmem:[%s1332_s5 + $0xd8] sm:$0xff] %v903_v53  ;;  %v901_v59 = vsel %vm837_vm9, %v805_v45, %v869_v51  ;;  %917 = vst [vmem:[%s1332_s5 + $0x48] sm:$0xff] %v885_v58  ;;  %v858_v0 = vmul.f32 0.01, %v794_v54  ;;  %vm842_vm11 = vcmp.gt.f32.partialorder %v810_v55, 0.0  ;;  %v795_v6 = vadd.f32 %v1140_v62, %v1322_v20  ;;  %v598_v8 = vpop.f32.mrb[15].mxu0 }
 0x104   : > { %933 = vst [vmem:[%s1332_s5 + $0xc8] sm:$0xff] %v901_v59  ;;  %v874_v1 = vmul.f32 0.01, %v810_v55  ;;  %vm824_vm12 = vcmp.gt.f32.partialorder %v792_v60, 0.0  ;;  %v856_v2 = vmul.f32 0.01, %v792_v60  ;;  %v811_v7 = vadd.f32 %v1156_v63, %v1322_v20 }
 0x105   : > { %vm840_vm13 = vcmp.gt.f32.partialorder %v808_v61, 0.0  ;;  %v872_v3 = vmul.f32 0.01, %v808_v61  ;;  %v890_v4 = vsel %vm826_vm10, %v794_v54, %v858_v0  ;;  %v662_v9 = vpop.f32.mrb[15].mxu1  ;;  %v793_v12 = vadd.f32 %v1322_v20, %v598_v8 }
 0x106   : > { %v906_v5 = vsel %vm842_vm11, %v810_v55, %v874_v1  ;;  %922 = vst [vmem:[%s1332_s5 + $0x70] sm:$0xff] %v890_v4  ;;  %v888_v10 = vsel %vm824_vm12, %v792_v60, %v856_v2  ;;  %v809_v13 = vadd.f32 %v1322_v20, %v662_v9  ;;  %vm827_vm14 = vcmp.gt.f32.partialorder %v795_v6, 0.0 }
 0x107   : > { %938 = vst [vmem:[%s1332_s5 + $0xf0] sm:$0xff] %v906_v5  ;;  %v904_v11 = vsel %vm840_vm13, %v808_v61, %v872_v3  ;;  %920 = vst [vmem:[%s1332_s5 + $0x60] sm:$0xff] %v888_v10  ;;  %v859_v14 = vmul.f32 0.01, %v795_v6  ;;  %vm843_vm15 = vcmp.gt.f32.partialorder %v811_v7, 0.0  ;;  %vm825_vm0 = vcmp.gt.f32.partialorder %v793_v12, 0.0 }
 0x108   : > { %936 = vst [vmem:[%s1332_s5 + $0xe0] sm:$0xff] %v904_v11  ;;  %v875_v15 = vmul.f32 0.01, %v811_v7  ;;  %v857_v16 = vmul.f32 0.01, %v793_v12  ;;  %vm841_vm1 = vcmp.gt.f32.partialorder %v809_v13, 0.0 }
 0x109   : > { %v873_v17 = vmul.f32 0.01, %v809_v13  ;;  %v891_v18 = vsel %vm827_vm14, %v795_v6, %v859_v14 }
 0x10a   : > { %v907_v19 = vsel %vm843_vm15, %v811_v7, %v875_v15  ;;  %923 = vst [vmem:[%s1332_s5 + $0x78] sm:$0xff] %v891_v18  ;;  %v889_v21 = vsel %vm825_vm0, %v793_v12, %v857_v16 }
 0x10b   : > { %939 = vst [vmem:[%s1332_s5 + $0xf8] sm:$0xff] %v907_v19  ;;  %v905_v22 = vsel %vm841_vm1, %v809_v13, %v873_v17  ;;  %921 = vst [vmem:[%s1332_s5 + $0x68] sm:$0xff] %v889_v21 }
 0x10c   : > { %937 = vst [vmem:[%s1332_s5 + $0xe8] sm:$0xff] %v905_v22 }
 0x10d PF: > { %s13_s14 = sadd.s32 1, %s1230_s14   ;;  %s1407_s12 = smov %s1226_s13 }
 0x10e   : > { %p10_p5 = scmp.ge.s32.totalorder %s13_s14, 4   ;;  %s1408_s13 = smov %s1410_s15 }
 0x110   :  { %12 = sbr.rel (!%p10_p5) target bundleno = 2 (0x2), region = 76 }

</bundles_post_ra>
